<compile_context>
chip_gen: v7x
topology: tpu7x:2x2x1
jax: 0.10.0
libtpu: 0.0.40
codegen_flags: <defaults>
</compile_context>

<pallas_src>
import jax
import jax.numpy as jnp
import numpy as np
from jax.experimental import pallas as pl
from jax.experimental.pallas import tpu as pltpu


def lstm_kernel(x_ref, h0_ref, c0_ref, wih_ref, whh_ref, b_ref,
                wout_ref, bout_ref,
                out_ref, hN_ref, cN_ref):
    # x_ref: (T, B, D); h0/c0: (B, H); wih: (D, 4H); whh: (H, 4H); b: (1, 4H)
    # wout: (1, H); bout: (1, 1); out_ref: (1, T); hN/cN: (B, H)
    T, B, _ = x_ref.shape
    H = h0_ref.shape[-1]
    G = 4 * H

    # ---- hoisted prologue (off the serial critical path) ----
    # Fused input projection + bias for ALL timesteps in one contraction.
    xw = jnp.einsum('tbd,dg->tbg', x_ref[...], wih_ref[...],
                    preferred_element_type=jnp.float32) + b_ref[...]   # (T, B, 4H)

    whh = whh_ref[...]      # (H, 4H)
    wout = wout_ref[...]    # (1, H)

    # Lane-index mask: gate order is (i, f, g, o); the g block gets tanh.
    lane = jax.lax.broadcasted_iota(jnp.int32, (B, G), 1)
    tanh_mask = (lane >= 2 * H) & (lane < 3 * H)

    h = h0_ref[...]         # (B, H) carried in registers
    c = c0_ref[...]

    outs = []
    for t in range(T):      # static unroll: full scheduler visibility across steps
        gates = xw[t] + jnp.dot(h, whh, preferred_element_type=jnp.float32)  # (B, 4H)
        act = jnp.where(tanh_mask, jnp.tanh(gates), jax.nn.sigmoid(gates))
        i_g = act[:, 0:H]
        f_g = act[:, H:2 * H]
        g_g = act[:, 2 * H:3 * H]
        o_g = act[:, 3 * H:]

        c = f_g * c + i_g * g_g
        h = o_g * jnp.tanh(c)

        # Linear(H, 1) on batch row 0: VPU multiply + lane reduce (no degenerate
        # N=1 MXU matmul, no (T,B,H) history scratch).
        outs.append(jnp.sum(h[0:1, :] * wout, axis=-1, keepdims=True))  # (1, 1)

    out_ref[...] = jnp.concatenate(outs, axis=1) + bout_ref[...]   # (1, T) lane-dense
    hN_ref[...] = h
    cN_ref[...] = c


def lstm_forward(x, h_state, c_state, params):
    """x: (B, T, D) batch_first; h_state/c_state: (1, B, H). Returns (outputs, h, c)."""
    w_ih, w_hh, b_ih, b_hh, w_out, b_out = params
    B, T, D = x.shape
    H = h_state.shape[-1]

    # torch packs gate rows as [i; f; g; o]; transposing keeps that order along
    # the fused 4H output axis.
    wih_f = w_ih.T.astype(jnp.float32)                     # (D, 4H)
    whh_f = w_hh.T.astype(jnp.float32)                     # (H, 4H)
    b_f = (b_ih + b_hh).reshape(1, 4 * H).astype(jnp.float32)
    wout = w_out.astype(jnp.float32)                       # (1, H)
    bout = b_out.reshape(1, 1).astype(jnp.float32)         # (1, 1)

    x_tbd = jnp.transpose(x, (1, 0, 2)).astype(jnp.float32)   # (T, B, D) time-major
    h0 = h_state[0].astype(jnp.float32)                        # (B, H)
    c0 = c_state[0].astype(jnp.float32)                        # (B, H)

    vmem = pl.BlockSpec(memory_space=pltpu.MemorySpace.VMEM)

    out_1t, hN, cN = pl.pallas_call(
        lstm_kernel,
        out_shape=(
            jax.ShapeDtypeStruct((1, T), jnp.float32),
            jax.ShapeDtypeStruct((B, H), jnp.float32),
            jax.ShapeDtypeStruct((B, H), jnp.float32),
        ),
        in_specs=[vmem] * 8,
        out_specs=(vmem, vmem, vmem),
    )(x_tbd, h0, c0, wih_f, whh_f, b_f, wout, bout)

    outputs = out_1t.reshape(T, 1)[None]   # (1, T, 1) == out(r_out[0, :]).unsqueeze(0)
    return outputs, hN[None], cN[None]


def lstm_ref(x, h_state, c_state, params):
    """Pure-JAX reference mirroring torch nn.LSTM + Linear semantics."""
    w_ih, w_hh, b_ih, b_hh, w_out, b_out = params
    H = h_state.shape[-1]
    h = h_state[0]
    c = c_state[0]
    outs = []
    for t in range(x.shape[1]):
        x_t = x[:, t, :]
        gates = x_t @ w_ih.T + h @ w_hh.T + b_ih + b_hh
        i = jax.nn.sigmoid(gates[:, :H])
        f = jax.nn.sigmoid(gates[:, H:2 * H])
        g = jnp.tanh(gates[:, 2 * H:3 * H])
        o = jax.nn.sigmoid(gates[:, 3 * H:])
        c = f * c + i * g
        h = o * jnp.tanh(c)
        outs.append(h)
    r = jnp.stack(outs, axis=1)          # (B, T, H)
    out = r[0] @ w_out.T + b_out         # (T, 1)
    return out[None], h[None], c[None]


if __name__ == "__main__":
    INPUT_SIZE = 4
    HIDDEN = 10
    B, T = 1, 8

    key = jax.random.PRNGKey(0)
    ks = jax.random.split(key, 10)
    k_scale = 1.0 / np.sqrt(HIDDEN)

    # Deterministic synthetic parameters (torch nn.LSTM / nn.Linear shapes).
    w_ih = jax.random.uniform(ks[0], (4 * HIDDEN, INPUT_SIZE), jnp.float32, -k_scale, k_scale)
    w_hh = jax.random.uniform(ks[1], (4 * HIDDEN, HIDDEN), jnp.float32, -k_scale, k_scale)
    b_ih = jax.random.uniform(ks[2], (4 * HIDDEN,), jnp.float32, -k_scale, k_scale)
    b_hh = jax.random.uniform(ks[3], (4 * HIDDEN,), jnp.float32, -k_scale, k_scale)
    w_out = jax.random.uniform(ks[4], (1, HIDDEN), jnp.float32, -k_scale, k_scale)
    b_out = jax.random.uniform(ks[5], (1,), jnp.float32, -k_scale, k_scale)
    params = (w_ih, w_hh, b_ih, b_hh, w_out, b_out)

    # Inputs: x is batch_first (B, T, INPUT_SIZE); h/c are (1, B, HIDDEN).
    x = jax.random.normal(ks[6], (B, T, INPUT_SIZE), jnp.float32)
    h_state = jax.random.uniform(ks[7], (1, B, HIDDEN), jnp.float32)
    c_state = jax.random.uniform(ks[8], (1, B, HIDDEN), jnp.float32)

    outputs, hN, cN = lstm_forward(x, h_state, c_state, params)
    outputs = jax.block_until_ready(outputs)
    hN = jax.block_until_ready(hN)
    cN = jax.block_until_ready(cN)

    # Sanity check against pure-JAX reference.
    out_r, h_r, c_r = lstm_ref(x, h_state, c_state, params)
    np.testing.assert_allclose(np.asarray(outputs), np.asarray(out_r), rtol=1e-3, atol=2e-3)
    np.testing.assert_allclose(np.asarray(hN), np.asarray(h_r), rtol=1e-3, atol=2e-3)
    np.testing.assert_allclose(np.asarray(cN), np.asarray(c_r), rtol=1e-3, atol=2e-3)

    assert outputs.shape == (1, T, 1)
    assert hN.shape == (1, B, HIDDEN) and cN.shape == (1, B, HIDDEN)
    print("KERNEL_OK")
</pallas_src>

<mosaic_0001>
module attributes {stable_mosaic.version = 11 : i64} {
  func.func @lstm_kernel(%arg0: memref<8x1x4xf32, #tpu.memory_space<vmem>>, %arg1: memref<1x10xf32, #tpu.memory_space<vmem>>, %arg2: memref<1x10xf32, #tpu.memory_space<vmem>>, %arg3: memref<4x40xf32, #tpu.memory_space<vmem>>, %arg4: memref<10x40xf32, #tpu.memory_space<vmem>>, %arg5: memref<1x40xf32, #tpu.memory_space<vmem>>, %arg6: memref<1x10xf32, #tpu.memory_space<vmem>>, %arg7: memref<1x1xf32, #tpu.memory_space<vmem>>, %arg8: memref<1x8xf32, #tpu.memory_space<vmem>>, %arg9: memref<1x10xf32, #tpu.memory_space<vmem>>, %arg10: memref<1x10xf32, #tpu.memory_space<vmem>>) attributes {dimension_semantics = [], scalar_prefetch = 0 : i64, scratch_operands = 0 : i64, tpu.core_type = #tpu.core_type<tc>} {
    %c0 = arith.constant 0 : index
    %c0_0 = arith.constant 0 : index
    %c0_1 = arith.constant 0 : index
    %0 = vector.load %arg0[%c0, %c0_0, %c0_1] : memref<8x1x4xf32, #tpu.memory_space<vmem>>, vector<8x1x4xf32>
    %c0_2 = arith.constant 0 : index
    %c0_3 = arith.constant 0 : index
    %1 = vector.load %arg3[%c0_2, %c0_3] : memref<4x40xf32, #tpu.memory_space<vmem>>, vector<4x40xf32>
    "tpu.trace_start"() <{level = 10 : i32, message = "tbd,dg->tbg"}> : () -> ()
    %cst = arith.constant dense<0.000000e+00> : vector<8x1x40xf32>
    %2 = tpu.matmul %0, %1, %cst {dimension_numbers = #tpu.dot_dimension_numbers<[2], [0], [0, 1], [1], [0, 0, 0, 1, 1, 1], [], []>} : vector<8x1x4xf32>, vector<4x40xf32>, vector<8x1x40xf32> -> vector<8x1x40xf32>
    "tpu.trace_stop"() : () -> ()
    %c0_4 = arith.constant 0 : index
    %c0_5 = arith.constant 0 : index
    %3 = vector.load %arg5[%c0_4, %c0_5] : memref<1x40xf32, #tpu.memory_space<vmem>>, vector<1x40xf32>
    %4 = vector.shape_cast %3 : vector<1x40xf32> to vector<1x1x40xf32>
    %5 = vector.broadcast %4 : vector<1x1x40xf32> to vector<8x1x40xf32>
    %6 = arith.addf %2, %5 : vector<8x1x40xf32>
    %c0_6 = arith.constant 0 : index
    %c0_7 = arith.constant 0 : index
    %7 = vector.load %arg4[%c0_6, %c0_7] : memref<10x40xf32, #tpu.memory_space<vmem>>, vector<10x40xf32>
    %c0_8 = arith.constant 0 : index
    %c0_9 = arith.constant 0 : index
    %8 = vector.load %arg6[%c0_8, %c0_9] : memref<1x10xf32, #tpu.memory_space<vmem>>, vector<1x10xf32>
    %9 = tpu.iota {dimensions = array<i32: 1>} : vector<1x40xi32>
    %c20_i32 = arith.constant 20 : i32
    %10 = vector.broadcast %c20_i32 : i32 to vector<1x40xi32>
    %11 = arith.cmpi sge, %9, %10 : vector<1x40xi32>
    %c30_i32 = arith.constant 30 : i32
    %12 = vector.broadcast %c30_i32 : i32 to vector<1x40xi32>
    %13 = arith.cmpi slt, %9, %12 : vector<1x40xi32>
    %14 = arith.andi %11, %13 : vector<1x40xi1>
    %c0_10 = arith.constant 0 : index
    %c0_11 = arith.constant 0 : index
    %15 = vector.load %arg1[%c0_10, %c0_11] : memref<1x10xf32, #tpu.memory_space<vmem>>, vector<1x10xf32>
    %c0_12 = arith.constant 0 : index
    %c0_13 = arith.constant 0 : index
    %16 = vector.load %arg2[%c0_12, %c0_13] : memref<1x10xf32, #tpu.memory_space<vmem>>, vector<1x10xf32>
    %17 = vector.extract_strided_slice %6 {offsets = [0, 0, 0], sizes = [1, 1, 40], strides = [1, 1, 1]} : vector<8x1x40xf32> to vector<1x1x40xf32>
    %18 = vector.shape_cast %17 : vector<1x1x40xf32> to vector<1x40xf32>
    %cst_14 = arith.constant dense<0.000000e+00> : vector<1x40xf32>
    %19 = tpu.matmul %15, %7, %cst_14 {dimension_numbers = #tpu.dot_dimension_numbers<[1], [0], [0], [1], [0, 0, 1, 1], [], []>} : vector<1x10xf32>, vector<10x40xf32>, vector<1x40xf32> -> vector<1x40xf32>
    %20 = arith.addf %18, %19 : vector<1x40xf32>
    %21 = math.tanh %20 : vector<1x40xf32>
    %22 = arith.negf %20 : vector<1x40xf32>
    %23 = math.exp %22 : vector<1x40xf32>
    %cst_15 = arith.constant 1.000000e+00 : f32
    %24 = vector.broadcast %cst_15 : f32 to vector<1x40xf32>
    %25 = arith.addf %24, %23 : vector<1x40xf32>
    %26 = arith.divf %24, %25 : vector<1x40xf32>
    %27 = arith.select %14, %21, %26 : vector<1x40xi1>, vector<1x40xf32>
    %28 = vector.extract_strided_slice %27 {offsets = [0, 0], sizes = [1, 10], strides = [1, 1]} : vector<1x40xf32> to vector<1x10xf32>
    %29 = vector.extract_strided_slice %27 {offsets = [0, 10], sizes = [1, 10], strides = [1, 1]} : vector<1x40xf32> to vector<1x10xf32>
    %30 = vector.extract_strided_slice %27 {offsets = [0, 20], sizes = [1, 10], strides = [1, 1]} : vector<1x40xf32> to vector<1x10xf32>
    %31 = vector.extract_strided_slice %27 {offsets = [0, 30], sizes = [1, 10], strides = [1, 1]} : vector<1x40xf32> to vector<1x10xf32>
    %32 = arith.mulf %29, %16 : vector<1x10xf32>
    %33 = arith.mulf %28, %30 : vector<1x10xf32>
    %34 = arith.addf %32, %33 : vector<1x10xf32>
    %35 = math.tanh %34 : vector<1x10xf32>
    %36 = arith.mulf %31, %35 : vector<1x10xf32>
    %37 = arith.mulf %36, %8 : vector<1x10xf32>
    %cst_16 = arith.constant dense<0.000000e+00> : vector<1xf32>
    %38 = vector.multi_reduction <add>, %37, %cst_16 [1] : vector<1x10xf32> to vector<1xf32>
    %39 = vector.shape_cast %38 : vector<1xf32> to vector<1x1xf32>
    %40 = vector.extract_strided_slice %6 {offsets = [1, 0, 0], sizes = [1, 1, 40], strides = [1, 1, 1]} : vector<8x1x40xf32> to vector<1x1x40xf32>
    %41 = vector.shape_cast %40 : vector<1x1x40xf32> to vector<1x40xf32>
    %cst_17 = arith.constant dense<0.000000e+00> : vector<1x40xf32>
    %42 = tpu.matmul %36, %7, %cst_17 {dimension_numbers = #tpu.dot_dimension_numbers<[1], [0], [0], [1], [0, 0, 1, 1], [], []>} : vector<1x10xf32>, vector<10x40xf32>, vector<1x40xf32> -> vector<1x40xf32>
    %43 = arith.addf %41, %42 : vector<1x40xf32>
    %44 = math.tanh %43 : vector<1x40xf32>
    %45 = arith.negf %43 : vector<1x40xf32>
    %46 = math.exp %45 : vector<1x40xf32>
    %cst_18 = arith.constant 1.000000e+00 : f32
    %47 = vector.broadcast %cst_18 : f32 to vector<1x40xf32>
    %48 = arith.addf %47, %46 : vector<1x40xf32>
    %49 = arith.divf %47, %48 : vector<1x40xf32>
    %50 = arith.select %14, %44, %49 : vector<1x40xi1>, vector<1x40xf32>
    %51 = vector.extract_strided_slice %50 {offsets = [0, 0], sizes = [1, 10], strides = [1, 1]} : vector<1x40xf32> to vector<1x10xf32>
    %52 = vector.extract_strided_slice %50 {offsets = [0, 10], sizes = [1, 10], strides = [1, 1]} : vector<1x40xf32> to vector<1x10xf32>
    %53 = vector.extract_strided_slice %50 {offsets = [0, 20], sizes = [1, 10], strides = [1, 1]} : vector<1x40xf32> to vector<1x10xf32>
    %54 = vector.extract_strided_slice %50 {offsets = [0, 30], sizes = [1, 10], strides = [1, 1]} : vector<1x40xf32> to vector<1x10xf32>
    %55 = arith.mulf %52, %34 : vector<1x10xf32>
    %56 = arith.mulf %51, %53 : vector<1x10xf32>
    %57 = arith.addf %55, %56 : vector<1x10xf32>
    %58 = math.tanh %57 : vector<1x10xf32>
    %59 = arith.mulf %54, %58 : vector<1x10xf32>
    %60 = arith.mulf %59, %8 : vector<1x10xf32>
    %cst_19 = arith.constant dense<0.000000e+00> : vector<1xf32>
    %61 = vector.multi_reduction <add>, %60, %cst_19 [1] : vector<1x10xf32> to vector<1xf32>
    %62 = vector.shape_cast %61 : vector<1xf32> to vector<1x1xf32>
    %63 = vector.extract_strided_slice %6 {offsets = [2, 0, 0], sizes = [1, 1, 40], strides = [1, 1, 1]} : vector<8x1x40xf32> to vector<1x1x40xf32>
    %64 = vector.shape_cast %63 : vector<1x1x40xf32> to vector<1x40xf32>
    %cst_20 = arith.constant dense<0.000000e+00> : vector<1x40xf32>
    %65 = tpu.matmul %59, %7, %cst_20 {dimension_numbers = #tpu.dot_dimension_numbers<[1], [0], [0], [1], [0, 0, 1, 1], [], []>} : vector<1x10xf32>, vector<10x40xf32>, vector<1x40xf32> -> vector<1x40xf32>
    %66 = arith.addf %64, %65 : vector<1x40xf32>
    %67 = math.tanh %66 : vector<1x40xf32>
    %68 = arith.negf %66 : vector<1x40xf32>
    %69 = math.exp %68 : vector<1x40xf32>
    %cst_21 = arith.constant 1.000000e+00 : f32
    %70 = vector.broadcast %cst_21 : f32 to vector<1x40xf32>
    %71 = arith.addf %70, %69 : vector<1x40xf32>
    %72 = arith.divf %70, %71 : vector<1x40xf32>
    %73 = arith.select %14, %67, %72 : vector<1x40xi1>, vector<1x40xf32>
    %74 = vector.extract_strided_slice %73 {offsets = [0, 0], sizes = [1, 10], strides = [1, 1]} : vector<1x40xf32> to vector<1x10xf32>
    %75 = vector.extract_strided_slice %73 {offsets = [0, 10], sizes = [1, 10], strides = [1, 1]} : vector<1x40xf32> to vector<1x10xf32>
    %76 = vector.extract_strided_slice %73 {offsets = [0, 20], sizes = [1, 10], strides = [1, 1]} : vector<1x40xf32> to vector<1x10xf32>
    %77 = vector.extract_strided_slice %73 {offsets = [0, 30], sizes = [1, 10], strides = [1, 1]} : vector<1x40xf32> to vector<1x10xf32>
    %78 = arith.mulf %75, %57 : vector<1x10xf32>
    %79 = arith.mulf %74, %76 : vector<1x10xf32>
    %80 = arith.addf %78, %79 : vector<1x10xf32>
    %81 = math.tanh %80 : vector<1x10xf32>
    %82 = arith.mulf %77, %81 : vector<1x10xf32>
    %83 = arith.mulf %82, %8 : vector<1x10xf32>
    %cst_22 = arith.constant dense<0.000000e+00> : vector<1xf32>
    %84 = vector.multi_reduction <add>, %83, %cst_22 [1] : vector<1x10xf32> to vector<1xf32>
    %85 = vector.shape_cast %84 : vector<1xf32> to vector<1x1xf32>
    %86 = vector.extract_strided_slice %6 {offsets = [3, 0, 0], sizes = [1, 1, 40], strides = [1, 1, 1]} : vector<8x1x40xf32> to vector<1x1x40xf32>
    %87 = vector.shape_cast %86 : vector<1x1x40xf32> to vector<1x40xf32>
    %cst_23 = arith.constant dense<0.000000e+00> : vector<1x40xf32>
    %88 = tpu.matmul %82, %7, %cst_23 {dimension_numbers = #tpu.dot_dimension_numbers<[1], [0], [0], [1], [0, 0, 1, 1], [], []>} : vector<1x10xf32>, vector<10x40xf32>, vector<1x40xf32> -> vector<1x40xf32>
    %89 = arith.addf %87, %88 : vector<1x40xf32>
    %90 = math.tanh %89 : vector<1x40xf32>
    %91 = arith.negf %89 : vector<1x40xf32>
    %92 = math.exp %91 : vector<1x40xf32>
    %cst_24 = arith.constant 1.000000e+00 : f32
    %93 = vector.broadcast %cst_24 : f32 to vector<1x40xf32>
    %94 = arith.addf %93, %92 : vector<1x40xf32>
    %95 = arith.divf %93, %94 : vector<1x40xf32>
    %96 = arith.select %14, %90, %95 : vector<1x40xi1>, vector<1x40xf32>
    %97 = vector.extract_strided_slice %96 {offsets = [0, 0], sizes = [1, 10], strides = [1, 1]} : vector<1x40xf32> to vector<1x10xf32>
    %98 = vector.extract_strided_slice %96 {offsets = [0, 10], sizes = [1, 10], strides = [1, 1]} : vector<1x40xf32> to vector<1x10xf32>
    %99 = vector.extract_strided_slice %96 {offsets = [0, 20], sizes = [1, 10], strides = [1, 1]} : vector<1x40xf32> to vector<1x10xf32>
    %100 = vector.extract_strided_slice %96 {offsets = [0, 30], sizes = [1, 10], strides = [1, 1]} : vector<1x40xf32> to vector<1x10xf32>
    %101 = arith.mulf %98, %80 : vector<1x10xf32>
    %102 = arith.mulf %97, %99 : vector<1x10xf32>
    %103 = arith.addf %101, %102 : vector<1x10xf32>
    %104 = math.tanh %103 : vector<1x10xf32>
    %105 = arith.mulf %100, %104 : vector<1x10xf32>
    %106 = arith.mulf %105, %8 : vector<1x10xf32>
    %cst_25 = arith.constant dense<0.000000e+00> : vector<1xf32>
    %107 = vector.multi_reduction <add>, %106, %cst_25 [1] : vector<1x10xf32> to vector<1xf32>
    %108 = vector.shape_cast %107 : vector<1xf32> to vector<1x1xf32>
    %109 = vector.extract_strided_slice %6 {offsets = [4, 0, 0], sizes = [1, 1, 40], strides = [1, 1, 1]} : vector<8x1x40xf32> to vector<1x1x40xf32>
    %110 = vector.shape_cast %109 : vector<1x1x40xf32> to vector<1x40xf32>
    %cst_26 = arith.constant dense<0.000000e+00> : vector<1x40xf32>
    %111 = tpu.matmul %105, %7, %cst_26 {dimension_numbers = #tpu.dot_dimension_numbers<[1], [0], [0], [1], [0, 0, 1, 1], [], []>} : vector<1x10xf32>, vector<10x40xf32>, vector<1x40xf32> -> vector<1x40xf32>
    %112 = arith.addf %110, %111 : vector<1x40xf32>
    %113 = math.tanh %112 : vector<1x40xf32>
    %114 = arith.negf %112 : vector<1x40xf32>
    %115 = math.exp %114 : vector<1x40xf32>
    %cst_27 = arith.constant 1.000000e+00 : f32
    %116 = vector.broadcast %cst_27 : f32 to vector<1x40xf32>
    %117 = arith.addf %116, %115 : vector<1x40xf32>
    %118 = arith.divf %116, %117 : vector<1x40xf32>
    %119 = arith.select %14, %113, %118 : vector<1x40xi1>, vector<1x40xf32>
    %120 = vector.extract_strided_slice %119 {offsets = [0, 0], sizes = [1, 10], strides = [1, 1]} : vector<1x40xf32> to vector<1x10xf32>
    %121 = vector.extract_strided_slice %119 {offsets = [0, 10], sizes = [1, 10], strides = [1, 1]} : vector<1x40xf32> to vector<1x10xf32>
    %122 = vector.extract_strided_slice %119 {offsets = [0, 20], sizes = [1, 10], strides = [1, 1]} : vector<1x40xf32> to vector<1x10xf32>
    %123 = vector.extract_strided_slice %119 {offsets = [0, 30], sizes = [1, 10], strides = [1, 1]} : vector<1x40xf32> to vector<1x10xf32>
    %124 = arith.mulf %121, %103 : vector<1x10xf32>
    %125 = arith.mulf %120, %122 : vector<1x10xf32>
    %126 = arith.addf %124, %125 : vector<1x10xf32>
    %127 = math.tanh %126 : vector<1x10xf32>
    %128 = arith.mulf %123, %127 : vector<1x10xf32>
    %129 = arith.mulf %128, %8 : vector<1x10xf32>
    %cst_28 = arith.constant dense<0.000000e+00> : vector<1xf32>
    %130 = vector.multi_reduction <add>, %129, %cst_28 [1] : vector<1x10xf32> to vector<1xf32>
    %131 = vector.shape_cast %130 : vector<1xf32> to vector<1x1xf32>
    %132 = vector.extract_strided_slice %6 {offsets = [5, 0, 0], sizes = [1, 1, 40], strides = [1, 1, 1]} : vector<8x1x40xf32> to vector<1x1x40xf32>
    %133 = vector.shape_cast %132 : vector<1x1x40xf32> to vector<1x40xf32>
    %cst_29 = arith.constant dense<0.000000e+00> : vector<1x40xf32>
    %134 = tpu.matmul %128, %7, %cst_29 {dimension_numbers = #tpu.dot_dimension_numbers<[1], [0], [0], [1], [0, 0, 1, 1], [], []>} : vector<1x10xf32>, vector<10x40xf32>, vector<1x40xf32> -> vector<1x40xf32>
    %135 = arith.addf %133, %134 : vector<1x40xf32>
    %136 = math.tanh %135 : vector<1x40xf32>
    %137 = arith.negf %135 : vector<1x40xf32>
    %138 = math.exp %137 : vector<1x40xf32>
    %cst_30 = arith.constant 1.000000e+00 : f32
    %139 = vector.broadcast %cst_30 : f32 to vector<1x40xf32>
    %140 = arith.addf %139, %138 : vector<1x40xf32>
    %141 = arith.divf %139, %140 : vector<1x40xf32>
    %142 = arith.select %14, %136, %141 : vector<1x40xi1>, vector<1x40xf32>
    %143 = vector.extract_strided_slice %142 {offsets = [0, 0], sizes = [1, 10], strides = [1, 1]} : vector<1x40xf32> to vector<1x10xf32>
    %144 = vector.extract_strided_slice %142 {offsets = [0, 10], sizes = [1, 10], strides = [1, 1]} : vector<1x40xf32> to vector<1x10xf32>
    %145 = vector.extract_strided_slice %142 {offsets = [0, 20], sizes = [1, 10], strides = [1, 1]} : vector<1x40xf32> to vector<1x10xf32>
    %146 = vector.extract_strided_slice %142 {offsets = [0, 30], sizes = [1, 10], strides = [1, 1]} : vector<1x40xf32> to vector<1x10xf32>
    %147 = arith.mulf %144, %126 : vector<1x10xf32>
    %148 = arith.mulf %143, %145 : vector<1x10xf32>
    %149 = arith.addf %147, %148 : vector<1x10xf32>
    %150 = math.tanh %149 : vector<1x10xf32>
    %151 = arith.mulf %146, %150 : vector<1x10xf32>
    %152 = arith.mulf %151, %8 : vector<1x10xf32>
    %cst_31 = arith.constant dense<0.000000e+00> : vector<1xf32>
    %153 = vector.multi_reduction <add>, %152, %cst_31 [1] : vector<1x10xf32> to vector<1xf32>
    %154 = vector.shape_cast %153 : vector<1xf32> to vector<1x1xf32>
    %155 = vector.extract_strided_slice %6 {offsets = [6, 0, 0], sizes = [1, 1, 40], strides = [1, 1, 1]} : vector<8x1x40xf32> to vector<1x1x40xf32>
    %156 = vector.shape_cast %155 : vector<1x1x40xf32> to vector<1x40xf32>
    %cst_32 = arith.constant dense<0.000000e+00> : vector<1x40xf32>
    %157 = tpu.matmul %151, %7, %cst_32 {dimension_numbers = #tpu.dot_dimension_numbers<[1], [0], [0], [1], [0, 0, 1, 1], [], []>} : vector<1x10xf32>, vector<10x40xf32>, vector<1x40xf32> -> vector<1x40xf32>
    %158 = arith.addf %156, %157 : vector<1x40xf32>
    %159 = math.tanh %158 : vector<1x40xf32>
    %160 = arith.negf %158 : vector<1x40xf32>
    %161 = math.exp %160 : vector<1x40xf32>
    %cst_33 = arith.constant 1.000000e+00 : f32
    %162 = vector.broadcast %cst_33 : f32 to vector<1x40xf32>
    %163 = arith.addf %162, %161 : vector<1x40xf32>
    %164 = arith.divf %162, %163 : vector<1x40xf32>
    %165 = arith.select %14, %159, %164 : vector<1x40xi1>, vector<1x40xf32>
    %166 = vector.extract_strided_slice %165 {offsets = [0, 0], sizes = [1, 10], strides = [1, 1]} : vector<1x40xf32> to vector<1x10xf32>
    %167 = vector.extract_strided_slice %165 {offsets = [0, 10], sizes = [1, 10], strides = [1, 1]} : vector<1x40xf32> to vector<1x10xf32>
    %168 = vector.extract_strided_slice %165 {offsets = [0, 20], sizes = [1, 10], strides = [1, 1]} : vector<1x40xf32> to vector<1x10xf32>
    %169 = vector.extract_strided_slice %165 {offsets = [0, 30], sizes = [1, 10], strides = [1, 1]} : vector<1x40xf32> to vector<1x10xf32>
    %170 = arith.mulf %167, %149 : vector<1x10xf32>
    %171 = arith.mulf %166, %168 : vector<1x10xf32>
    %172 = arith.addf %170, %171 : vector<1x10xf32>
    %173 = math.tanh %172 : vector<1x10xf32>
    %174 = arith.mulf %169, %173 : vector<1x10xf32>
    %175 = arith.mulf %174, %8 : vector<1x10xf32>
    %cst_34 = arith.constant dense<0.000000e+00> : vector<1xf32>
    %176 = vector.multi_reduction <add>, %175, %cst_34 [1] : vector<1x10xf32> to vector<1xf32>
    %177 = vector.shape_cast %176 : vector<1xf32> to vector<1x1xf32>
    %178 = vector.extract_strided_slice %6 {offsets = [7, 0, 0], sizes = [1, 1, 40], strides = [1, 1, 1]} : vector<8x1x40xf32> to vector<1x1x40xf32>
    %179 = vector.shape_cast %178 : vector<1x1x40xf32> to vector<1x40xf32>
    %cst_35 = arith.constant dense<0.000000e+00> : vector<1x40xf32>
    %180 = tpu.matmul %174, %7, %cst_35 {dimension_numbers = #tpu.dot_dimension_numbers<[1], [0], [0], [1], [0, 0, 1, 1], [], []>} : vector<1x10xf32>, vector<10x40xf32>, vector<1x40xf32> -> vector<1x40xf32>
    %181 = arith.addf %179, %180 : vector<1x40xf32>
    %182 = math.tanh %181 : vector<1x40xf32>
    %183 = arith.negf %181 : vector<1x40xf32>
    %184 = math.exp %183 : vector<1x40xf32>
    %cst_36 = arith.constant 1.000000e+00 : f32
    %185 = vector.broadcast %cst_36 : f32 to vector<1x40xf32>
    %186 = arith.addf %185, %184 : vector<1x40xf32>
    %187 = arith.divf %185, %186 : vector<1x40xf32>
    %188 = arith.select %14, %182, %187 : vector<1x40xi1>, vector<1x40xf32>
    %189 = vector.extract_strided_slice %188 {offsets = [0, 0], sizes = [1, 10], strides = [1, 1]} : vector<1x40xf32> to vector<1x10xf32>
    %190 = vector.extract_strided_slice %188 {offsets = [0, 10], sizes = [1, 10], strides = [1, 1]} : vector<1x40xf32> to vector<1x10xf32>
    %191 = vector.extract_strided_slice %188 {offsets = [0, 20], sizes = [1, 10], strides = [1, 1]} : vector<1x40xf32> to vector<1x10xf32>
    %192 = vector.extract_strided_slice %188 {offsets = [0, 30], sizes = [1, 10], strides = [1, 1]} : vector<1x40xf32> to vector<1x10xf32>
    %193 = arith.mulf %190, %172 : vector<1x10xf32>
    %194 = arith.mulf %189, %191 : vector<1x10xf32>
    %195 = arith.addf %193, %194 : vector<1x10xf32>
    %196 = math.tanh %195 : vector<1x10xf32>
    %197 = arith.mulf %192, %196 : vector<1x10xf32>
    %198 = arith.mulf %197, %8 : vector<1x10xf32>
    %cst_37 = arith.constant dense<0.000000e+00> : vector<1xf32>
    %199 = vector.multi_reduction <add>, %198, %cst_37 [1] : vector<1x10xf32> to vector<1xf32>
    %200 = vector.shape_cast %199 : vector<1xf32> to vector<1x1xf32>
    %201 = tpu.concatenate %39, %62, %85, %108, %131, %154, %177, %200 in 1 : vector<1x1xf32>, vector<1x1xf32>, vector<1x1xf32>, vector<1x1xf32>, vector<1x1xf32>, vector<1x1xf32>, vector<1x1xf32>, vector<1x1xf32> -> vector<1x8xf32>
    %c0_38 = arith.constant 0 : index
    %c0_39 = arith.constant 0 : index
    %202 = vector.load %arg7[%c0_38, %c0_39] : memref<1x1xf32, #tpu.memory_space<vmem>>, vector<1x1xf32>
    %203 = vector.broadcast %202 : vector<1x1xf32> to vector<1x8xf32>
    %204 = arith.addf %201, %203 : vector<1x8xf32>
    %c0_40 = arith.constant 0 : index
    %c0_41 = arith.constant 0 : index
    %205 = vector.load %arg8[%c0_40, %c0_41] : memref<1x8xf32, #tpu.memory_space<vmem>>, vector<1x8xf32>
    tpu.vector_store %arg8[%c0_40, %c0_41], %204 {strides = array<i32>} : memref<1x8xf32, #tpu.memory_space<vmem>>, vector<1x8xf32>,
    %c0_42 = arith.constant 0 : index
    %c0_43 = arith.constant 0 : index
    %206 = vector.load %arg9[%c0_42, %c0_43] : memref<1x10xf32, #tpu.memory_space<vmem>>, vector<1x10xf32>
    tpu.vector_store %arg9[%c0_42, %c0_43], %197 {strides = array<i32>} : memref<1x10xf32, #tpu.memory_space<vmem>>, vector<1x10xf32>,
    %c0_44 = arith.constant 0 : index
    %c0_45 = arith.constant 0 : index
    %207 = vector.load %arg10[%c0_44, %c0_45] : memref<1x10xf32, #tpu.memory_space<vmem>>, vector<1x10xf32>
    tpu.vector_store %arg10[%c0_44, %c0_45], %195 {strides = array<i32>} : memref<1x10xf32, #tpu.memory_space<vmem>>, vector<1x10xf32>,
    return
  }
}

</mosaic_0001>

<bundles_post_ra>
// kernel: tpu_custom_call.1
= control target key start
LH: loop header
LB: loop body
LE: loop exit
PB: predicated region body
PF: predicated region fallthrough
CT: control target
= control target key end

     0   :  { %s1895_s0 = inlined_call_operand.vmem [shape: f32[8,1,4], index: 0, kind: input, shape index: {}]   ;;  %s1896_s1 = inlined_call_operand.vmem [shape: f32[1,10], index: 1, kind: input, shape index: {}]   ;;  %s1897_s2 = inlined_call_operand.vmem [shape: f32[1,10], index: 2, kind: input, shape index: {}]   ;;  %s1898_s3 = inlined_call_operand.vmem [shape: f32[4,40], index: 3, kind: input, shape index: {}]   ;;  %s1899_s4 = inlined_call_operand.vmem [shape: f32[10,40], index: 4, kind: input, shape index: {}]   ;;  %s1900_s5 = inlined_call_operand.vmem [shape: f32[1,40], index: 5, kind: input, shape index: {}]   ;;  %s1901_s6 = inlined_call_operand.vmem [shape: f32[1,10], index: 6, kind: input, shape index: {}]   ;;  %s1902_s7 = inlined_call_operand.<no memory space> [shape: f32[1,1], index: 7, kind: input, shape index: {}]   ;;  %s1903_s8 = inlined_call_operand.hbm [shape: f32[1,8], index: 8, kind: output, shape index: {0}]   ;;  %s1904_s9 = inlined_call_operand.hbm [shape: f32[1,10], index: 9, kind: output, shape index: {1}]   ;;  %s1905_s10 = inlined_call_operand.hbm [shape: f32[1,10], index: 10, kind: output, shape index: {2}]  }
   0x1   :  { %v16_v0 = vstv %s1902_s7 }
   0x2   :  { %17 = vst [vmem:[#allocation2] sm:$0x1] %v16_v0 }
   0x3   :  { %18 = vsyncpa [#allocation4], 0  ;;  %v44_v1 = vld [vmem:[%s1898_s3] sm:$0xf]  ;;  %vm125_vm0 = vcmask 1043456   ;;  %v61_v2 = vlaneseq  ;;  %v1534_v4 = vmov 0.0  }
   0x4   :  { %v257_v3 = vld [vmem:[%s1899_s4] sm:$0xff]  ;;  %1290 = vmatprep.subr.mxu0 %v1534_v4  ;;  %vm1535_vm1 = vmmov 0   ;;  %v1536_v14 = vmov 1966171168   ;;  %v258_v17 = vld [vmem:[%s1899_s4 + $0x8] sm:$0x3] }
   0x5   :  { %1292 = vmatprep.mubr.msk.f32.mxu0 %vm1535_vm1, %v1534_v4  ;;  %v36_v5 = vld [vmem:[%s1895_s0] sm:$0x1]  ;;  %v37_v6 = vld [vmem:[%s1895_s0 + $0x1] sm:$0x1]  ;;  %v38_v7 = vld [vmem:[%s1895_s0 + $0x2] sm:$0x1]  ;;  %1291 = vmatpush3.msk.msra.mxu0 %vm125_vm0, %v44_v1  ;;  %v59_v15 = vunpack.c.l.s4 %v1536_v14  ;;  %v1648_v18 = vpack.c.bf16 %v258_v17, %v257_v3 }
   0x6   :  { %v39_v8 = vld [vmem:[%s1895_s0 + $0x3] sm:$0x1]  ;;  %v40_v9 = vld [vmem:[%s1895_s0 + $0x4] sm:$0x1]  ;;  %v41_v10 = vld [vmem:[%s1895_s0 + $0x5] sm:$0x1]  ;;  %1299 = vmatprep.mubr.msk.f32.mxu1 %vm1535_vm1, %v1534_v4  ;;  %v54_v13 = vcombine.low %v36_v5, %v37_v6 }
   0x7   :  { %v42_v11 = vld [vmem:[%s1895_s0 + $0x6] sm:$0x1]  ;;  %v43_v12 = vld [vmem:[%s1895_s0 + $0x7] sm:$0x1]  ;;  %v1643_v16 = vshrl.u32 %v61_v2, 7  ;;  %vm271_vm2 = vcmask 1041408   ;;  %v55_v19 = vcombine.low %v38_v7, %v39_v8  ;;  %v56_v20 = vcombine.low %v40_v9, %v41_v10 }
   0x8   :  { %v57_v21 = vcombine.low %v42_v11, %v43_v12  ;;  %v60_v22 = vunpack.c.0.s8 %v59_v15  ;;  %v1537_v23 = vmov 0.0|0.0   ;;  %vm1538_vm3 = vmmov 1   ;;  %v265_v25 = vld [vmem:[%s1896_s1] sm:$0x1] }
   0x9   :  { %1351 = vmatprep.subr.bf16.mxu1 %v1537_v23  ;;  %vm1651_vm4 = vmpackc.low %vm271_vm2, %vm1538_vm3  ;;  %1355 = vmatprep.subr.bf16.mxu0 %v1537_v23  ;;  %vm267_vm5 = vcmask 80896  }
   0xa   :  { %1354 = vmatpush3.bf16.msk.msra.mxu1 %vm1651_vm4, %v1648_v18 }
   0xb   :  { %19 = vsyncpa [#allocation6], 0  ;;  %v1663_v26 = vsub.s32 %v60_v22, %v1643_v16  ;;  %1359 = vmatprep.subr.bf16.mxu1 %v1537_v23  ;;  %vm122_vm6 = vcmask 31744   ;;  %v1399_v36 = vld [vmem:[%s1900_s5] ss:$0 sps:$4 sm:$0x11]  }
   0xc   :  { %v261_v52 = vand.u32 127, %v61_v2  ;;  %s1539_s5 = smov 108   ;;  %v1241_v57 = vld [vmem:[%s1897_s2] ss:$0 sm:$0xff]  ;;  %s1540_s18 = smov 10   ;;  %vm392_vm10 = vcmask 73728  }
   0xd   :  { %v64_v27 = vrot.slane %v54_v13, %v1663_v26  ;;  %v71_v28 = vrot.slane %v55_v19, %v1663_v26  ;;  %v78_v29 = vrot.slane %v56_v20, %v1663_v26  ;;  %v85_v30 = vrot.slane %v57_v21, %v1663_v26  ;;  %1300 = vmatmul.mubr.msk.f32.vlgmr.msra.gmra.mrb[0].mxu1 %vm267_vm5, %v265_v25  ;;  %s1541_s7 = smov 20   ;;  %s1542_s2 = smov 98  }
   0xe   :  { %1362 = vmatpush3.bf16.msk.msra.mxu1 %vm1651_vm4, %v1648_v18  ;;  %1313 = vmatprep.mubr.msk.f32.mxu1 %vm1535_vm1, %v1534_v4  ;;  %v111_v37 = vrot.slane %v1399_v36, %v1663_v26  ;;  %vm262_vm7 = vcmp.ge.s32.totalorder %v261_v52, 20  ;;  %vm263_vm8 = vcmp.lt.s32.totalorder %v261_v52, 30  ;;  %s1543_s21 = smov 30   ;;  %vm1159_vm11 = vcmask 7168   ;;  %s1546_s3 = smov [#allocation5]  }
   0xf   :  { %v86_v31 = vcombine.low %v64_v27, %v71_v28  ;;  %v87_v32 = vcombine.low %v78_v29, %v85_v30  ;;  %1367 = vmatprep.subr.bf16.mxu1 %v1537_v23  ;;  %vm1700_vm9 = vmand %vm262_vm7, %vm263_vm8  ;;  %vm1161_vm12 = vcmask 15360   ;;  %vm1163_vm13 = vcmask 23552   ;;  %s1211_s22 = sshll.u32 %s1546_s3, 4  ;;  %s1212_s22 = int_to_ptr.vmem [resolvable:$true] %s1211_s22 }
  0x10   :  { %v112_v38 = vcombine.low %v111_v37, %v111_v37  ;;  %s1464_s23 = scalar_lea.vmem %s1212_s22, 16  ;;  %s1468_s24 = scalar_lea.vmem %s1212_s22, 32 }
  0x11   :  { %v94_v33 = vrot.slane %v86_v31, %v1663_v26  ;;  %v101_v34 = vrot.slane %v87_v32, %v1663_v26  ;;  %p1465_p0 = scmp.ne.s32.totalorder %s1212_s22, %s1464_s23  ;;  %p1469_p1 = scmp.lt.s32.totalorder %s1212_s22, %s1212_s22 }
  0x12   :  { %v119_v40 = vrot.slane %v112_v38, %v1663_v26  ;;  %p1470_p2 = scmp.lt.s32.totalorder %s1468_s24, %s1464_s23 }
  0x13   :  { %v102_v35 = vcombine.low %v94_v33, %v101_v34 }
  0x14   :  { %v120_v42 = vcombine.low %v119_v40, %v119_v40  ;;  %p1471_p3 = por %p1470_p2, %p1469_p1 }
  0x15   :  { %1293 = vmatmul.mubr.msk.f32.vlgmr.msra.gmra.mrb[0].mxu0 %vm122_vm6, %v102_v35 }
  0x16   :  { %1358 = vmatpush3.bf16.msk.msra.mxu0 %vm1651_vm4, %v1648_v18  ;;  %1306 = vmatprep.mubr.msk.f32.mxu0 %vm1535_vm1, %v1534_v4  ;;  %p1472_p4 = pnand %p1471_p3, %p1465_p0 }
  0x17   :  { %1363 = vmatprep.subr.bf16.mxu0 %v1537_v23 }
  0xe0   :  { %v341_v39 = vpop.f32.mrb[0].mxu1 }
  0xe1   :  { %v1301_v41 = vpop.f32.mrb[1].mxu1 }
  0xe8   :  { %v195_v43 = vpop.f32.mrb[0].mxu0 }
  0xe9   :  { %v1691_v44 = vadd.f32 %v195_v43, %v120_v42  ;;  %v1294_v45 = vpop.f32.mrb[1].mxu0 }
  0xeb   :  { %v207_v46 = vrot.slane %v1691_v44, %v1663_v26 }
  0xed   :  { %v1696_v47 = vrot.slane %v207_v46, %v1663_v26  ;;  %v215_v5 = vcombine.high %v207_v46, %v207_v46 }
  0xef   :  { %v345_v48 = vadd.f32 %v341_v39, %v1696_v47  ;;  %v1725_v6 = vrot.slane %v215_v5, %v1663_v26  ;;  %v245_v30 = vcombine.high %v1696_v47, %v1696_v47 }
  0xf1   :  { %v1240_v49 = vmul.f32 -1.442695, %v345_v48 }
  0xf3   :  { %1400 = vpow2.f32 %v1240_v49 }
  0xf4   :  { %1402 = vtanh.f32 %v345_v48 }
  0xfd   :  { %v1401_v50 = vpop.eup %1400 }
  0xfe   :  { %v350_v51 = vadd.f32 1.0, %v1401_v50  ;;  %v1403_v54 = vpop.eup %1402  ;;  %v247_v50 = vcombine.high %v1725_v6, %v1725_v6 }
 0x100   :  { %1404 = vrcp.f32 %v350_v51 }
 0x10a   :  { %v1405_v55 = vpop.eup %1404 }
 0x10b   :  { %v353_v56 = vsel %vm1700_vm9, %v1403_v54, %v1405_v55 }
 0x10c   :  { %364 = vrot.lane.b32.xlu0 %v353_v56, %s1539_s5 }
 0x110   :  { %359 = vrot.lane.b32.xlu0 %v1241_v57, %s1540_s18 }
 0x17e   :  { %v365_v58 = vpop.permute.xlu0 %364 }
 0x17f   :  { %v367_v59 = vmul.f32 %v365_v58, %v353_v56 }
 0x181   :  { %369 = vrot.lane.b32.xlu1 %v367_v59, %s1540_s18 }
 0x182   :  { %v360_v60 = vpop.permute.xlu0 %359 }
 0x183   :  { %v362_v61 = vmul.f32 %v360_v60, %v353_v56 }
 0x1f3   :  { %v370_v62 = vpop.permute.xlu1 %369 }
 0x1f4   :  { %v372_v63 = vadd.f32 %v370_v62, %v362_v61 }
 0x1f6   :  { %1406 = vtanh.f32 %v372_v63 }
 0x200   :  { %v1407_v0 = vpop.eup %1406 }
 0x201   :  { %375 = vrot.lane.b32.xlu1 %v1407_v0, %s1541_s7 }
 0x273   :  { %v376_v1 = vpop.permute.xlu1 %375 }
 0x274   :  { %v1713_v2 = vmul.f32 %v376_v1, %v353_v56 }
 0x276   :  { %397 = vrot.lane.b32.xlu0 %v1713_v2, %s1542_s2 }
 0x2e8   :  { %v398_v3 = vpop.permute.xlu0 %397 }
 0x2e9   :  { %1307 = vmatmul.mubr.msk.f32.vlgmr.msra.gmra.mrb[2].mxu0 %vm267_vm5, %v398_v3 }
 0x2ea   :  { %1366 = vmatpush3.bf16.msk.msra.mxu0 %vm1651_vm4, %v1648_v18  ;;  %1320 = vmatprep.mubr.msk.f32.mxu0 %vm1535_vm1, %v1534_v4 }
 0x2eb   :  { %1371 = vmatprep.subr.bf16.mxu0 %v1537_v23 }
 0x3bc   :  { %v467_v7 = vpop.f32.mrb[2].mxu0 }
 0x3bd   :  { %v471_v8 = vadd.f32 %v467_v7, %v1725_v6  ;;  %v1308_v9 = vpop.f32.mrb[3].mxu0  ;;  %v200_v7 = vcombine.high %v1691_v44, %v1691_v44 }
 0x3bf   :  { %v1245_v10 = vmul.f32 -1.442695, %v471_v8 }
 0x3c1   :  { %1408 = vpow2.f32 %v1245_v10 }
 0x3c2   :  { %1410 = vtanh.f32 %v471_v8  ;;  %v214_v8 = vrot.slane %v200_v7, %v1663_v26 }
 0x3c4   :  { %v230_v9 = vrot.slane %v214_v8, %v1663_v26 }
 0x3cb   :  { %v1409_v11 = vpop.eup %1408 }
 0x3cc   :  { %v476_v12 = vadd.f32 1.0, %v1409_v11  ;;  %v1411_v13 = vpop.eup %1410 }
 0x3ce   :  { %1412 = vrcp.f32 %v476_v12 }
 0x3d8   :  { %v1413_v14 = vpop.eup %1412 }
 0x3d9   :  { %v479_v15 = vsel %vm1700_vm9, %v1411_v13, %v1413_v14 }
 0x3da   :  { %482 = vrot.lane.b32.xlu1 %v479_v15, %s1539_s5  ;;  %v480_v20 = vmul.f32 %v479_v15, %v372_v63 }
 0x44c   :  { %v483_v17 = vpop.permute.xlu1 %482 }
 0x44d   :  { %v485_v19 = vmul.f32 %v483_v17, %v479_v15 }
 0x44f   :  { %487 = vrot.lane.b32.xlu0 %v485_v19, %s1540_s18 }
 0x4c1   :  { %v488_v21 = vpop.permute.xlu0 %487 }
 0x4c2   :  { %v490_v22 = vadd.f32 %v488_v21, %v480_v20 }
 0x4c4   :  { %1414 = vtanh.f32 %v490_v22 }
 0x4ce   :  { %v1415_v25 = vpop.eup %1414 }
 0x4cf   :  { %493 = vrot.lane.b32.xlu1 %v1415_v25, %s1541_s7 }
 0x541   :  { %v494_v27 = vpop.permute.xlu1 %493 }
 0x542   :  { %v1733_v28 = vmul.f32 %v494_v27, %v479_v15 }
 0x544   :  { %506 = vrot.lane.b32.xlu0 %v1733_v28, %s1542_s2 }
 0x5b6   :  { %v507_v29 = vpop.permute.xlu0 %506 }
 0x5b7   :  { %1314 = vmatmul.mubr.msk.f32.vlgmr.msra.gmra.mrb[2].mxu1 %vm267_vm5, %v507_v29 }
 0x5b8   :  { %1370 = vmatpush3.bf16.msk.msra.mxu1 %vm1651_vm4, %v1648_v18  ;;  %1327 = vmatprep.mubr.msk.f32.mxu1 %vm1535_vm1, %v1534_v4 }
 0x5b9   :  { %1375 = vmatprep.subr.bf16.mxu1 %v1537_v23 }
 0x68a   :  { %v576_v31 = vpop.f32.mrb[2].mxu1 }
 0x68b   :  { %v580_v32 = vadd.f32 %v576_v31, %v245_v30  ;;  %v1315_v33 = vpop.f32.mrb[3].mxu1 }
 0x68c   :  { %v216_v33 = vcombine.high %v214_v8, %v214_v8 }
 0x68d   :  { %v1248_v34 = vmul.f32 -1.442695, %v580_v32 }
 0x68f   :  { %1416 = vpow2.f32 %v1248_v34  ;;  %v244_v34 = vrot.slane %v216_v33, %v1663_v26 }
 0x690   :  { %1418 = vtanh.f32 %v580_v32 }
 0x699   :  { %v1417_v35 = vpop.eup %1416 }
 0x69a   :  { %v585_v36 = vadd.f32 1.0, %v1417_v35  ;;  %v1419_v37 = vpop.eup %1418 }
 0x69c   :  { %1420 = vrcp.f32 %v585_v36 }
 0x6a6   :  { %v1421_v38 = vpop.eup %1420 }
 0x6a7   :  { %v588_v39 = vsel %vm1700_vm9, %v1419_v37, %v1421_v38 }
 0x6a8   :  { %591 = vrot.lane.b32.xlu1 %v588_v39, %s1539_s5  ;;  %v589_v42 = vmul.f32 %v588_v39, %v490_v22 }
 0x71a   :  { %v592_v40 = vpop.permute.xlu1 %591 }
 0x71b   :  { %v594_v41 = vmul.f32 %v592_v40, %v588_v39 }
 0x71d   :  { %596 = vrot.lane.b32.xlu0 %v594_v41, %s1540_s18 }
 0x78f   :  { %v597_v43 = vpop.permute.xlu0 %596 }
 0x790   :  { %v599_v45 = vadd.f32 %v597_v43, %v589_v42 }
 0x792   :  { %1422 = vtanh.f32 %v599_v45 }
 0x79c   :  { %v1423_v46 = vpop.eup %1422 }
 0x79d   :  { %602 = vrot.lane.b32.xlu1 %v1423_v46, %s1541_s7 }
 0x80f   :  { %v603_v47 = vpop.permute.xlu1 %602 }
 0x810   :  { %v1751_v48 = vmul.f32 %v603_v47, %v588_v39 }
 0x812   :  { %615 = vrot.lane.b32.xlu0 %v1751_v48, %s1542_s2 }
 0x884   :  { %v616_v49 = vpop.permute.xlu0 %615 }
 0x885   :  { %1321 = vmatmul.mubr.msk.f32.vlgmr.msra.gmra.mrb[4].mxu0 %vm267_vm5, %v616_v49 }
 0x886   :  { %1374 = vmatpush3.bf16.msk.msra.mxu0 %vm1651_vm4, %v1648_v18  ;;  %1334 = vmatprep.mubr.msk.f32.mxu0 %vm1535_vm1, %v1534_v4 }
 0x887   :  { %1379 = vmatprep.subr.bf16.mxu0 %v1537_v23 }
 0x958   :  { %v685_v51 = vpop.f32.mrb[4].mxu0 }
 0x959   :  { %v689_v52 = vadd.f32 %v685_v51, %v247_v50  ;;  %v1322_v54 = vpop.f32.mrb[5].mxu0  ;;  %v246_v51 = vcombine.high %v230_v9, %v230_v9 }
 0x95b   :  { %v1251_v55 = vmul.f32 -1.442695, %v689_v52 }
 0x95d   :  { %1424 = vpow2.f32 %v1251_v55 }
 0x95e   :  { %1426 = vtanh.f32 %v689_v52 }
 0x967   :  { %v1425_v56 = vpop.eup %1424 }
 0x968   :  { %v694_v57 = vadd.f32 1.0, %v1425_v56  ;;  %v1427_v58 = vpop.eup %1426 }
 0x96a   :  { %1428 = vrcp.f32 %v694_v57 }
 0x974   :  { %v1429_v59 = vpop.eup %1428 }
 0x975   :  { %v697_v60 = vsel %vm1700_vm9, %v1427_v58, %v1429_v59 }
 0x976   :  { %700 = vrot.lane.b32.xlu1 %v697_v60, %s1539_s5  ;;  %v698_v62 = vmul.f32 %v697_v60, %v599_v45 }
 0x9e8   :  { %v701_v23 = vpop.permute.xlu1 %700 }
 0x9e9   :  { %v703_v61 = vmul.f32 %v701_v23, %v697_v60 }
 0x9eb   :  { %705 = vrot.lane.b32.xlu0 %v703_v61, %s1540_s18 }
 0xa5d   :  { %v706_v63 = vpop.permute.xlu0 %705 }
 0xa5e   :  { %v708_v0 = vadd.f32 %v706_v63, %v698_v62 }
 0xa60   :  { %1430 = vtanh.f32 %v708_v0 }
 0xa6a   :  { %v1431_v1 = vpop.eup %1430 }
 0xa6b   :  { %711 = vrot.lane.b32.xlu1 %v1431_v1, %s1541_s7 }
 0xadd   :  { %v712_v3 = vpop.permute.xlu1 %711 }
 0xade   :  { %v1769_v5 = vmul.f32 %v712_v3, %v697_v60 }
 0xae0   :  { %724 = vrot.lane.b32.xlu0 %v1769_v5, %s1542_s2 }
 0xb52   :  { %v725_v6 = vpop.permute.xlu0 %724 }
 0xb53   :  { %1328 = vmatmul.mubr.msk.f32.vlgmr.msra.gmra.mrb[4].mxu1 %vm267_vm5, %v725_v6 }
 0xb54   :  { %1378 = vmatpush3.bf16.msk.msra.mxu1 %vm1651_vm4, %v1648_v18  ;;  %1341 = vmatprep.mubr.msk.f32.mxu1 %vm1535_vm1, %v1534_v4 }
 0xc26   :  { %v794_v10 = vpop.f32.mrb[4].mxu1 }
 0xc27   :  { %v798_v11 = vadd.f32 %v794_v10, %v230_v9  ;;  %v1329_v12 = vpop.f32.mrb[5].mxu1  ;;  %v248_v9 = vcombine.high %v244_v34, %v244_v34 }
 0xc29   :  { %v1254_v13 = vmul.f32 -1.442695, %v798_v11 }
 0xc2b   :  { %1432 = vpow2.f32 %v1254_v13 }
 0xc2c   :  { %1434 = vtanh.f32 %v798_v11 }
 0xc35   :  { %v1433_v14 = vpop.eup %1432 }
 0xc36   :  { %v803_v15 = vadd.f32 1.0, %v1433_v14  ;;  %v1435_v17 = vpop.eup %1434 }
 0xc38   :  { %1436 = vrcp.f32 %v803_v15 }
 0xc42   :  { %v1437_v19 = vpop.eup %1436 }
 0xc43   :  { %v806_v20 = vsel %vm1700_vm9, %v1435_v17, %v1437_v19 }
 0xc44   :  { %809 = vrot.lane.b32.xlu1 %v806_v20, %s1539_s5  ;;  %v807_v22 = vmul.f32 %v806_v20, %v708_v0 }
 0xcb6   :  { %v810_v44 = vpop.permute.xlu1 %809 }
 0xcb7   :  { %v812_v21 = vmul.f32 %v810_v44, %v806_v20  ;;  %v1242_v44 = vld [vmem:[%s1901_s6] ss:$0 sm:$0xff]  ;;  %s1545_s6 = smov 118  }
 0xcb9   :  { %814 = vrot.lane.b32.xlu0 %v812_v21, %s1540_s18 }
 0xd2b   :  { %v815_v25 = vpop.permute.xlu0 %814 }
 0xd2c   :  { %v817_v27 = vadd.f32 %v815_v25, %v807_v22 }
 0xd2e   :  { %1438 = vtanh.f32 %v817_v27 }
 0xd38   :  { %v1439_v29 = vpop.eup %1438 }
 0xd39   :  { %820 = vrot.lane.b32.xlu1 %v1439_v29, %s1541_s7 }
 0xdab   :  { %v821_v30 = vpop.permute.xlu1 %820 }
 0xdac   :  { %v1788_v31 = vmul.f32 %v821_v30, %v806_v20 }
 0xdae   :  { %833 = vrot.lane.b32.xlu0 %v1788_v31, %s1542_s2 }
 0xe20   :  { %v834_v32 = vpop.permute.xlu0 %833 }
 0xe21   :  { %1335 = vmatmul.mubr.msk.f32.vlgmr.msra.gmra.mrb[6].mxu0 %vm267_vm5, %v834_v32 }
 0xe22   :  { %1382 = vmatpush3.bf16.msk.msra.mxu0 %vm1651_vm4, %v1648_v18  ;;  %1348 = vmatprep.mubr.msk.f32.mxu0 %vm1535_vm1, %v1534_v4 }
 0xef4   :  { %v903_v35 = vpop.f32.mrb[6].mxu0 }
 0xef5   :  { %v907_v36 = vadd.f32 %v903_v35, %v244_v34  ;;  %v1336_v37 = vpop.f32.mrb[7].mxu0 }
 0xef7   :  { %v1257_v38 = vmul.f32 -1.442695, %v907_v36 }
 0xef9   :  { %1440 = vpow2.f32 %v1257_v38 }
 0xefa   :  { %1442 = vtanh.f32 %v907_v36 }
 0xf03   :  { %v1441_v39 = vpop.eup %1440 }
 0xf04   :  { %v912_v40 = vadd.f32 1.0, %v1441_v39  ;;  %v1443_v41 = vpop.eup %1442 }
 0xf06   :  { %1444 = vrcp.f32 %v912_v40 }
 0xf10   :  { %v1445_v42 = vpop.eup %1444 }
 0xf11   :  { %v915_v18 = vsel %vm1700_vm9, %v1443_v41, %v1445_v42 }
 0xf12   :  { %918 = vrot.lane.b32.xlu1 %v915_v18, %s1539_s5  ;;  %v916_v26 = vmul.f32 %v915_v18, %v817_v27 }
 0xf84   :  { %v919_v4 = vpop.permute.xlu1 %918 }
 0xf85   :  { %v921_v24 = vmul.f32 %v919_v4, %v915_v18 }
 0xf87   :  { %923 = vrot.lane.b32.xlu0 %v921_v24, %s1540_s18 }
 0xff9   :  { %v924_v43 = vpop.permute.xlu0 %923 }
 0xffa   :  { %v926_v45 = vadd.f32 %v924_v43, %v916_v26 }
 0xffc   :  { %1446 = vtanh.f32 %v926_v45 }
0x1006   :  { %v1447_v46 = vpop.eup %1446 }
0x1007   :  { %929 = vrot.lane.b32.xlu1 %v1447_v46, %s1541_s7  ;;  %v1544_v46 = vmov 0  }
0x1008   :  { %1398 = vset.pattern.permute.xlu0 %v1544_v46 }
0x1079   :  { %v930_v47 = vpop.permute.xlu1 %929 }
0x107a   :  { %v1804_v49 = vmul.f32 %v930_v47, %v915_v18 }
0x107c   :  { %942 = vrot.lane.b32.xlu0 %v1804_v49, %s1542_s2 }
0x10ee   :  { %v943_v50 = vpop.permute.xlu0 %942 }
0x10ef   :  { %1342 = vmatmul.mubr.msk.f32.vlgmr.msra.gmra.mrb[6].mxu1 %vm267_vm5, %v943_v50 }
0x11c2   :  { %v1012_v52 = vpop.f32.mrb[6].mxu1 }
0x11c3   :  { %v1016_v54 = vadd.f32 %v1012_v52, %v246_v51  ;;  %v1343_v55 = vpop.f32.mrb[7].mxu1 }
0x11c5   :  { %v1260_v56 = vmul.f32 -1.442695, %v1016_v54 }
0x11c7   :  { %1448 = vpow2.f32 %v1260_v56 }
0x11c8   :  { %1450 = vtanh.f32 %v1016_v54 }
0x11d1   :  { %v1449_v57 = vpop.eup %1448 }
0x11d2   :  { %v1021_v58 = vadd.f32 1.0, %v1449_v57  ;;  %v1451_v59 = vpop.eup %1450 }
0x11d4   :  { %1452 = vrcp.f32 %v1021_v58  ;;  %v1172_v58 = vld [vmem:[#allocation2] sm:$0x1] }
0x11de   :  { %v1453_v60 = vpop.eup %1452 }
0x11df   :  { %v1024_v23 = vsel %vm1700_vm9, %v1451_v59, %v1453_v60 }
0x11e0   :  { %1027 = vrot.lane.b32.xlu1 %v1024_v23, %s1539_s5  ;;  %v1025_v63 = vmul.f32 %v1024_v23, %v926_v45 }
0x1252   :  { %v1028_v61 = vpop.permute.xlu1 %1027 }
0x1253   :  { %v1030_v62 = vmul.f32 %v1028_v61, %v1024_v23 }
0x1255   :  { %1032 = vrot.lane.b32.xlu0 %v1030_v62, %s1540_s18 }
0x12c7   :  { %v1033_v0 = vpop.permute.xlu0 %1032 }
0x12c8   :  { %v1035_v1 = vadd.f32 %v1033_v0, %v1025_v63 }
0x12ca   :  { %1454 = vtanh.f32 %v1035_v1 }
0x12d4   :  { %v1455_v3 = vpop.eup %1454 }
0x12d5   :  { %1038 = vrot.lane.b32.xlu1 %v1455_v3, %s1541_s7 }
0x1347   :  { %v1039_v6 = vpop.permute.xlu1 %1038 }
0x1348   :  { %v1041_v7 = vmul.f32 %v1039_v6, %v1024_v23 }
0x134a   :  { %1051 = vrot.lane.b32.xlu0 %v1041_v7, %s1542_s2 }
0x13bc   :  { %v1052_v8 = vpop.permute.xlu0 %1051 }
0x13bd   :  { %1349 = vmatmul.mubr.msk.f32.vlgmr.msra.gmra.mrb[8].mxu0 %vm267_vm5, %v1052_v8 }
0x1490   :  { %v1121_v10 = vpop.f32.mrb[8].mxu0 }
0x1491   :  { %v1125_v11 = vadd.f32 %v1121_v10, %v248_v9  ;;  %v1350_v12 = vpop.f32.mrb[9].mxu0 }
0x1493   :  { %v1263_v13 = vmul.f32 -1.442695, %v1125_v11 }
0x1495   :  { %1456 = vpow2.f32 %v1263_v13 }
0x1496   :  { %1458 = vtanh.f32 %v1125_v11 }
0x149f   :  { %v1457_v14 = vpop.eup %1456 }
0x14a0   :  { %v1130_v15 = vadd.f32 1.0, %v1457_v14  ;;  %v1459_v17 = vpop.eup %1458 }
0x14a2   :  { %1460 = vrcp.f32 %v1130_v15 }
0x14ac   :  { %v1461_v19 = vpop.eup %1460 }
0x14ad   :  { %v1133_v20 = vsel %vm1700_vm9, %v1459_v17, %v1461_v19 }
0x14ae   :  { %1136 = vrot.lane.b32.xlu1 %v1133_v20, %s1539_s5  ;;  %v1134_v33 = vmul.f32 %v1133_v20, %v1035_v1 }
0x14b2   :  { %384 = vrot.lane.b32.xlu1 %v1242_v44, %s1543_s21 }
0x1520   :  { %v1137_v21 = vpop.permute.xlu1 %1136 }
0x1521   :  { %v1139_v22 = vmul.f32 %v1137_v21, %v1133_v20 }
0x1523   :  { %1141 = vrot.lane.b32.xlu0 %v1139_v22, %s1540_s18 }
0x1524   :  { %v385_v25 = vpop.permute.xlu1 %384 }
0x1525   :  { %v387_v27 = vmul.f32 %v385_v25, %v1713_v2  ;;  %v497_v53 = vmul.f32 %v1733_v28, %v385_v25  ;;  %v606_v28 = vmul.f32 %v1751_v48, %v385_v25  ;;  %v715_v37 = vmul.f32 %v1769_v5, %v385_v25 }
0x1526   :  { %v824_v48 = vmul.f32 %v1788_v31, %v385_v25  ;;  %v1042_v26 = vmul.f32 %v1041_v7, %v385_v25  ;;  %v933_v45 = vmul.f32 %v1804_v49, %v385_v25 }
0x1527   :  { %389 = vrot.lane.b32.xlu0 %v387_v27, %s1542_s2 }
0x152b   :  { %499 = vrot.lane.b32.xlu0 %v497_v53, %s1542_s2 }
0x1595   :  { %v1142_v29 = vpop.permute.xlu0 %1141 }
0x1596   :  { %v1144_v34 = vadd.f32 %v1142_v29, %v1134_v33 }
0x1598   :  { %1462 = vtanh.f32 %v1144_v34 }
0x1599   :  { %v390_v30 = vpop.permute.xlu0 %389 }
0x159a   :  { %v393_v32 = vsel %vm392_vm10, %v390_v30, 0.0 }
0x159b   :  { %394 = vadd.xlane.f32.xlu1 %v393_v32 }
0x159d   :  { %v500_v35 = vpop.permute.xlu0 %499 }
0x159e   :  { %v502_v36 = vsel %vm392_vm10, %v500_v35, 0.0 }
0x159f   :  { %503 = vadd.xlane.f32.xlu0 %v502_v36 }
0x15a2   :  { %v1463_v2 = vpop.eup %1462 }
0x15ac   :  { %1147 = vrot.lane.b32.xlu1 %v1463_v2, %s1541_s7 }
0x15b5   :  { %608 = vrot.lane.b32.xlu0 %v606_v28, %s1542_s2 }
0x15b9   :  { %717 = vrot.lane.b32.xlu0 %v715_v37, %s1542_s2 }
0x1628   :  { %v395_v38 = vpop.xlane.xlu1 %394 }
0x162c   :  { %v504_v39 = vpop.xlane.xlu0 %503  ;;  %v1148_v24 = vpop.permute.xlu1 %1147 }
0x162d   :  { %v1160_v40 = vsel %vm1159_vm11, %v395_v38, %v504_v39  ;;  %v1150_v5 = vmul.f32 %v1148_v24, %v1133_v20 }
0x162f   :  { %v1151_v43 = vmul.f32 %v1150_v5, %v385_v25 }
0x1630   :  { %v609_v41 = vpop.permute.xlu0 %608 }
0x1631   :  { %v611_v42 = vsel %vm392_vm10, %v609_v41, 0.0 }
0x1632   :  { %612 = vadd.xlane.f32.xlu1 %v611_v42 }
0x1634   :  { %v718_v18 = vpop.permute.xlu0 %717 }
0x1635   :  { %v720_v4 = vsel %vm392_vm10, %v718_v18, 0.0 }
0x1636   :  { %721 = vadd.xlane.f32.xlu0 %v720_v4 }
0x1643   :  { %826 = vrot.lane.b32.xlu1 %v824_v48, %s1542_s2 }
0x1647   :  { %1044 = vrot.lane.b32.xlu1 %v1042_v26, %s1542_s2 }
0x164b   :  { %1153 = vrot.lane.b32.xlu1 %v1151_v43, %s1542_s2 }
0x164c   :  { %935 = vrot.lane.b32.xlu0 %v933_v45, %s1542_s2 }
0x16bf   :  { %v613_v47 = vpop.xlane.xlu1 %612 }
0x16c0   :  { %v1162_v50 = vsel %vm1161_vm12, %v1160_v40, %v613_v47 }
0x16c3   :  { %v722_v31 = vpop.xlane.xlu0 %721  ;;  %v827_v51 = vpop.permute.xlu1 %826 }
0x16c4   :  { %v1164_v52 = vsel %vm1163_vm13, %v1162_v50, %v722_v31  ;;  %v829_v54 = vsel %vm392_vm10, %v827_v51, 0.0 }
0x16c5   :  { %830 = vadd.xlane.f32.xlu1 %v829_v54 }
0x16c7   :  { %v936_v55 = vpop.permute.xlu0 %935  ;;  %v1045_v49 = vpop.permute.xlu1 %1044 }
0x16c8   :  { %v938_v56 = vsel %vm392_vm10, %v936_v55, 0.0  ;;  %v1047_v57 = vsel %vm392_vm10, %v1045_v49, 0.0 }
0x16c9   :  { %939 = vadd.xlane.f32.xlu0 %v938_v56 }
0x16cb   :  { %v1154_v59 = vpop.permute.xlu1 %1153 }
0x16cc   :  { %v1156_v60 = vsel %vm392_vm10, %v1154_v59, 0.0 }
0x16cd   :  { %1048 = vadd.xlane.f32.xlu0 %v1047_v57 }
0x16d6   :  { %1186 = vrot.lane.b32.xlu1 %v1150_v5, %s1542_s2 }
0x16e3   :  { %1175 = vperm.xlu0 %1398, %v1172_v58  }
0x16fa   :  { %1157 = vadd.xlane.f32.xlu1 %v1156_v60 }
0x170b   :  { %1191 = vrot.lane.b32.xlu1 %v1144_v34, %s1545_s6 }
0x1752   :  { %v831_v23 = vpop.xlane.xlu1 %830 }
0x1756   :  { %v1187_v61 = vpop.permute.xlu1 %1186 }
0x1757   :  { %1189 = vst.msk [vmem:[#allocation5] sm:$0x1] %vm392_vm10, %v1187_v61 }
0x1758   :  { %1475 = shalt.err (!%p1472_p4)
}
0x1759   :  { %s1476_s27 = scalar_lea.hbm %s1904_s9, 16 }
0x175a   :  { %p1477_p5 = scmp.ne.s32.totalorder %s1904_s9, %s1476_s27  ;;  %p1480_p6 = scmp.lt.u32.totalorder %s1476_s27, %s1904_s9 }
0x175c   :  { %p1482_p7 = pnand %p1480_p6, %p1477_p5 }
0x175e   :  { %1485 = shalt.err (!%p1482_p7)
}
0x175f   :  { %1214 = dma.vmem_to_hbm [thread:$0]  %s1212_s22, 16, %s1904_s9, [#allocation6]   ;;  %v940_v62 = vpop.xlane.xlu0 %939  ;;  %v1180_v0 = vsub.s32 0, %v1643_v16  ;;  %vm1166_vm14 = vcmask 39936   ;;  %vm1168_vm15 = vcmask 48128   ;;  %v1165_v3 = vsel %vm122_vm6, %v1164_v52, %v831_v23 }
0x1760   :  { %vm1170_vm0 = vcmask 56320   ;;  %v1167_v7 = vsel %vm1166_vm14, %v1165_v3, %v940_v62  ;;  %s1547_s14 = smov [#allocation3]   ;;  %s1548_s4 = smov [#allocation7]   ;;  %vm1183_vm1 = vcmask 57344  }
0x1761   :  { %s1201_s0 = sshll.u32 %s1547_s14, 4  ;;  %s1221_s1 = sshll.u32 %s1548_s4, 4  ;;  %s1202_s0 = int_to_ptr.vmem [resolvable:$true] %s1201_s0  ;;  %s1862_s1 = int_to_ptr.vmem [resolvable:$true] %s1221_s1 }
0x1762   :  { %s1486_s9 = scalar_lea.vmem %s1202_s0, 16  ;;  %s1490_s15 = scalar_lea.vmem %s1202_s0, 32 }
0x1763   :  { %v1049_v63 = vpop.xlane.xlu0 %1048  ;;  %p1487_p8 = scmp.ne.s32.totalorder %s1202_s0, %s1486_s9  ;;  %p1491_p9 = scmp.lt.s32.totalorder %s1202_s0, %s1202_s0 }
0x1764   :  { %v1169_v8 = vsel %vm1168_vm15, %v1167_v7, %v1049_v63  ;;  %p1492_p10 = scmp.lt.s32.totalorder %s1490_s15, %s1486_s9 }
0x1766   :  { %p1493_p11 = por %p1492_p10, %p1491_p9 }
0x1767   :  { %v1176_v1 = vpop.permute.xlu0 %1175 }
0x1768   :  { %v1181_v6 = vrot.slane %v1176_v1, %v1180_v0  ;;  %p1494_p12 = pnand %p1493_p11, %p1487_p8 }
0x1787   :  { %v1158_v9 = vpop.xlane.xlu1 %1157 }
0x1788   :  { %v1171_v10 = vsel %vm1170_vm0, %v1169_v8, %v1158_v9 }
0x1789   :  { %v1182_v11 = vadd.f32 %v1181_v6, %v1171_v10 }
0x178b   :  { %v1192_v16 = vpop.permute.xlu1 %1191  ;;  %1184 = vst.msk [vmem:[#allocation3] sm:$0x1] %vm1183_vm1, %v1182_v11 }
0x178c   :  { %1194 = vst.msk [vmem:[#allocation7] sm:$0x1] %vm392_vm10, %v1192_v16 }
0x178d   :  { %1497 = shalt.err (!%p1494_p12)
}
0x178e   :  { %s1498_s17 = scalar_lea.hbm %s1903_s8, 16 }
0x178f   :  { %p1499_p13 = scmp.ne.s32.totalorder %s1903_s8, %s1498_s17  ;;  %p1502_p0 = scmp.lt.u32.totalorder %s1498_s17, %s1903_s8 }
0x1791   :  { %p1504_p1 = pnand %p1502_p0, %p1499_p13 }
0x1793   :  { %1507 = shalt.err (!%p1504_p1)
}
0x1794   :  { %1204 = dma.vmem_to_hbm [thread:$0]  %s1202_s0, 16, %s1903_s8, [#allocation4]  }
0x1795   :  { %s1508_s6 = scalar_lea.vmem %s1862_s1, 16  ;;  %s1512_s3 = scalar_lea.vmem %s1862_s1, 32 }
0x1796   :  { %p1509_p2 = scmp.ne.s32.totalorder %s1862_s1, %s1508_s6  ;;  %p1513_p3 = scmp.lt.s32.totalorder %s1862_s1, %s1862_s1 }
0x1797   :  { %p1514_p4 = scmp.lt.s32.totalorder %s1512_s3, %s1508_s6 }
0x1799   :  { %p1515_p5 = por %p1514_p4, %p1513_p3 }
0x179b   :  { %p1516_p6 = pnand %p1515_p5, %p1509_p2 }
0x179d   :  { %1519 = shalt.err (!%p1516_p6)
}
0x179e   :  { %s1520_s24 = scalar_lea.hbm %s1905_s10, 16 }
0x179f   :  { %p1521_p7 = scmp.ne.s32.totalorder %s1905_s10, %s1520_s24  ;;  %p1524_p8 = scmp.lt.u32.totalorder %s1520_s24, %s1905_s10 }
0x17a1   :  { %p1526_p9 = pnand %p1524_p8, %p1521_p7 }
0x17a3   :  { %1529 = shalt.err (!%p1526_p9)
}
0x17a4   :  { %1224 = dma.vmem_to_hbm [thread:$0]  %s1862_s1, 16, %s1905_s10, [#allocation6]  }
0x17a5   :  { %1530 = dma.done.wait [#allocation4], 16  }
0x17a6   :  { %1531 = vsyncadd [#allocation4], 4294967280 }
0x17a7   :  { %1532 = dma.done.wait [#allocation6], 32  }
0x17a8   :  { %1533 = vsyncadd [#allocation6], 4294967264 }
0x17a9   :  { %1234 = vsyncpa [#allocation4], 1 }
0x17aa   :  { %1235 = vsyncpa [#allocation6], 1 }

</bundles_post_ra>
